<compile_context>
chip_gen: v7x
topology: tpu7x:2x2x1
jax: 0.10.0
libtpu: 0.0.40
codegen_flags: <defaults>
</compile_context>

<pallas_src>
import functools

import jax
import jax.numpy as jnp
from jax.experimental import pallas as pl
from jax.experimental.pallas import tpu as pltpu


def _pick_m_chunk(M, requested):
    """Largest convenient codebook chunk (multiple of 8) that divides M."""
    for c in (requested, 128, 64, 32, 16, 8):
        if c and 8 <= c <= M and M % c == 0:
            return c
    return M


def _vq_kernel(xt_ref, e2_ref, emb_ref, idx_ref, cnt_ref, sqe_ref, *,
               n_valid, tile_n, tiles_per_split, m_chunk):
    """One grid step: codebook search for a (D, tile_n) slab of x^T.

    Transposed (M_chunk, TN) orientation keeps the argmin a sublane reduction with a
    lane-dense (1, TN) int32 index output; counts are lane reductions into (M, 1).
    """
    s = pl.program_id(0)          # core-split ("parallel") axis
    t = pl.program_id(1)          # row-tile ("arbitrary") axis

    xt = xt_ref[...]              # (D, TN) pre-transposed, MXU-ready RHS
    TN = xt.shape[1]
    M = emb_ref.shape[0]
    n_chunks = M // m_chunk

    # (Mc, TN) sublane iota, built once per tile and reused by both chunk passes.
    base_iota = jax.lax.broadcasted_iota(jnp.int32, (m_chunk, TN), 0)

    # ---- pass 1: chunked codebook search with a running min / argmin -------------
    def argmin_chunk(c, carry):
        best_d, best_i = carry
        r0 = pl.multiple_of(c * m_chunk, m_chunk)
        e_chunk = emb_ref[pl.ds(r0, m_chunk), :]          # (Mc, D)
        e2_chunk = e2_ref[pl.ds(r0, m_chunk), :]          # (Mc, 1) f32
        xe = jnp.dot(e_chunk, xt, preferred_element_type=jnp.float32)   # (Mc, TN)
        # ||x||^2 per-row constant is dropped from the argmin distance entirely.
        dist = e2_chunk - 2.0 * xe                        # (Mc, TN)
        cmin = jnp.min(dist, axis=0, keepdims=True)       # (1, TN)
        carg = jnp.min(jnp.where(dist == cmin, base_iota, m_chunk),
                       axis=0, keepdims=True) + c * m_chunk
        take = cmin < best_d                              # strict -> first occurrence wins
        return jnp.where(take, cmin, best_d), jnp.where(take, carg, best_i)

    best_d, best_i = jax.lax.fori_loop(
        0, n_chunks, argmin_chunk,
        (jnp.full((1, TN), jnp.inf, dtype=jnp.float32),
         jnp.full((1, TN), M, dtype=jnp.int32)))

    idx_ref[...] = best_i.reshape(idx_ref.shape)          # lane-dense int32 store

    # ---- ragged-tail masking: only (1, TN) selects, never an (M, TN) mask --------
    row0 = (s * tiles_per_split + t) * tile_n
    lane_iota = jax.lax.broadcasted_iota(jnp.int32, (1, TN), 1)
    valid = (row0 + lane_iota) < n_valid                  # (1, TN) bool
    idx_valid = jnp.where(valid, best_i, M)               # padded lanes match no code
    dmin_valid = jnp.where(valid, best_d, 0.0)

    @pl.when(t == 0)
    def _():
        cnt_ref[...] = jnp.zeros_like(cnt_ref)
        sqe_ref[...] = jnp.zeros_like(sqe_ref)

    # sum_r ||x_r - e_idx(r)||^2 == sum ||x||^2 (added in the wrapper) + sum_r dmin_r.
    # Keep the accumulator lane-shaped; the final cross-lane reduce is in the wrapper.
    sqe_ref[...] += dmin_valid.reshape(sqe_ref.shape)

    # ---- pass 2: per-code counts, chunked; static offsets -> plain static stores --
    for c in range(n_chunks):
        match = (base_iota == (idx_valid - c * m_chunk)).astype(jnp.float32)  # (Mc, TN)
        cnt_ref[pl.ds(c * m_chunk, m_chunk), :] += jnp.sum(match, axis=1, keepdims=True)


def vq_embedding_forward(x, embedding, *, tile_n=512, m_chunk=64,
                         core_splits=2, threshold=1.0):
    """Forward pass of VQEmbeddingEMA_DDP (eval mode). x: (B, T, D), embedding: (M, D)."""
    bsz, tsz, D = x.shape
    M, D2 = embedding.shape
    assert D == D2
    assert tile_n % 128 == 0, "tile_n must be a multiple of 128 (lane-dense layout)"

    N = bsz * tsz
    total_tiles = pl.cdiv(N, tile_n)
    splits = max(1, min(core_splits, total_tiles))        # leading "parallel" axis (v7x: 2 TCs)
    tiles_per_split = pl.cdiv(total_tiles, splits)
    total_tiles = splits * tiles_per_split
    n_pad = total_tiles * tile_n
    mc = _pick_m_chunk(M, m_chunk)

    x_flat = x.reshape(N, D)
    # sum ||x||^2 over the valid rows, hoisted out of the kernel (one fused XLA reduce).
    sum_x2 = jnp.sum(jnp.square(x_flat.astype(jnp.float32)))

    # Pre-transpose once so the kernel's MXU RHS is (D, TN): K on sublanes, rows on lanes.
    x_t = x_flat.T
    if n_pad != N:
        x_t = jnp.pad(x_t, ((0, 0), (0, n_pad - N)))

    emb_f32 = embedding.astype(jnp.float32)
    # ||e_j||^2 is grid-invariant: precompute once in f32.
    e2 = jnp.sum(emb_f32 * emb_f32, axis=1, keepdims=True)          # (M, 1)

    kernel = functools.partial(_vq_kernel, n_valid=N, tile_n=tile_n,
                               tiles_per_split=tiles_per_split, m_chunk=mc)

    # TODO(synk): for production-size codebooks on v7x (64 MiB VMEM), stream the
    # grid-invariant (M, D) codebook block (memory_space=pl.ANY + one manual DMA, or
    # pipeline_mode=pl.Buffered(1)) instead of letting the pipeline double-buffer it.
    idx_tiles, cnt_parts, dmin_parts = pl.pallas_call(
        kernel,
        out_shape=(
            jax.ShapeDtypeStruct((total_tiles, 1, tile_n), jnp.int32),   # lane-dense indices
            jax.ShapeDtypeStruct((splits * M, 1), jnp.float32),          # per-split counts
            jax.ShapeDtypeStruct((splits, 1, tile_n), jnp.float32),      # per-split sum(dmin)
        ),
        grid_spec=pltpu.PrefetchScalarGridSpec(
            num_scalar_prefetch=0,
            grid=(splits, tiles_per_split),
            in_specs=[
                pl.BlockSpec((D, tile_n), lambda s, t: (0, s * tiles_per_split + t)),
                pl.BlockSpec((M, 1), lambda s, t: (0, 0)),      # ||e||^2 (grid-invariant)
                pl.BlockSpec((M, D), lambda s, t: (0, 0)),      # codebook (grid-invariant)
            ],
            out_specs=(
                pl.BlockSpec((1, 1, tile_n), lambda s, t: (s * tiles_per_split + t, 0, 0)),
                pl.BlockSpec((M, 1), lambda s, t: (s, 0)),      # resident across t
                pl.BlockSpec((1, 1, tile_n), lambda s, t: (s, 0, 0)),   # resident across t
            ),
        ),
        compiler_params=pltpu.CompilerParams(
            dimension_semantics=("parallel", "arbitrary"),
        ),
    )(x_t, e2, embedding)

    idx_flat = idx_tiles.reshape(-1)[:N]                                 # (N,)

    # Quantized rows are reconstructed with a small gather (no (N, D) kernel writeback).
    quantized = jnp.take(embedding, idx_flat, axis=0).reshape(bsz, tsz, D)
    quantized_st = x + jax.lax.stop_gradient(quantized.astype(x.dtype) - x)

    counts = cnt_parts.reshape(splits, M).sum(axis=0)                    # (M,)
    used_curr = jnp.sum((counts >= threshold).astype(jnp.float32))
    avg_probs = counts / jnp.float32(N)
    perplexity = jnp.exp(-jnp.sum(avg_probs * jnp.log(avg_probs + 1e-10)))
    commitment_loss = (sum_x2 + jnp.sum(dmin_parts)) / jnp.float32(N * D)

    # Key naming follows the PyTorch module exactly (prob_perplexity <- used_curr,
    # codebook_usage <- perplexity), odd as it looks.
    return {
        "quantized_feature": quantized_st,
        "quantization_inds": idx_flat.reshape(bsz, tsz, 1),
        "prob_perplexity": used_curr,
        "codebook_usage": perplexity,
        "commitment_loss": commitment_loss,
    }


if __name__ == "__main__":
    # Module __init__ shapes: embedding (n_embeddings, embedding_dim),
    # uniform(-1/n_embeddings, 1/n_embeddings), deterministic via PRNGKey(0).
    n_embeddings = 256
    embedding_dim = 32
    bsz, tsz = 2, 160          # N = 320

    key = jax.random.PRNGKey(0)
    k_emb, k_x = jax.random.split(key)
    init_bound = 1.0 / n_embeddings
    embedding = jax.random.uniform(
        k_emb, (n_embeddings, embedding_dim),
        minval=-init_bound, maxval=init_bound, dtype=jnp.float32)
    x = jax.random.normal(k_x, (bsz, tsz, embedding_dim), dtype=jnp.float32) * 0.01

    # tile_n=128 at this tiny N exercises multi-tile, core-split and ragged-tail paths;
    # the production default is tile_n=512.
    out = vq_embedding_forward(x, embedding, tile_n=128, m_chunk=64, core_splits=2)
    jax.block_until_ready(out)

    # ---- correctness checks against a pure-JAX reference -----------------------
    x_flat = x.reshape(-1, embedding_dim)
    N = x_flat.shape[0]
    # Same argmin as torch's addmm distance (the +||x||^2 per-row constant dropped).
    ref_dist = (jnp.sum(embedding ** 2, axis=1)[None, :]
                - 2.0 * (x_flat @ embedding.T))
    idx_k = out["quantization_inds"].reshape(-1)

    # 1) every chosen code is (numerically) a nearest code
    d_chosen = jnp.take_along_axis(ref_dist, idx_k[:, None], axis=1)[:, 0]
    d_best = jnp.min(ref_dist, axis=-1)
    assert bool(jnp.all(d_chosen <= d_best + 1e-5))

    # 2) quantized forward value == gathered codebook rows
    q_expected = embedding[idx_k].reshape(x.shape)
    assert jnp.allclose(out["quantized_feature"], q_expected, atol=1e-6)

    # 3) usage / perplexity consistent with the returned indices
    cnt = jnp.sum(jax.nn.one_hot(idx_k, n_embeddings, dtype=jnp.float32), axis=0)
    used = jnp.sum((cnt >= 1.0).astype(jnp.float32))
    avg = cnt / N
    perp = jnp.exp(-jnp.sum(avg * jnp.log(avg + 1e-10)))
    assert jnp.allclose(out["prob_perplexity"], used)
    assert jnp.allclose(out["codebook_usage"], perp, atol=1e-4, rtol=1e-4)

    # 4) commitment loss == mse(x, quantized)
    mse = jnp.mean((x_flat - embedding[idx_k]) ** 2)
    assert jnp.allclose(out["commitment_loss"], mse, atol=1e-6, rtol=1e-4)

    # Also exercise the default config (single tile, splits collapse to 1).
    out2 = vq_embedding_forward(x, embedding)
    jax.block_until_ready(out2)
    assert jnp.allclose(out2["commitment_loss"], mse, atol=1e-6, rtol=1e-4)

    print("KERNEL_OK")
</pallas_src>

<mosaic_0001>
module attributes {stable_mosaic.version = 11 : i64} {
  func.func @_vq_kernel(%arg0: i32, %arg1: i32, %arg2: memref<32x128xf32, #tpu.memory_space<vmem>>, %arg3: memref<256x1xf32, #tpu.memory_space<vmem>>, %arg4: memref<256x32xf32, #tpu.memory_space<vmem>>, %arg5: memref<1x1x128xi32, #tpu.memory_space<vmem>>, %arg6: memref<256x1xf32, #tpu.memory_space<vmem>>, %arg7: memref<1x1x128xf32, #tpu.memory_space<vmem>>) attributes {dimension_semantics = [#tpu.dimension_semantics<parallel>, #tpu.dimension_semantics<arbitrary>], iteration_bounds = array<i64: 2, 2>, scalar_prefetch = 0 : i64, scratch_operands = 0 : i64, tpu.core_type = #tpu.core_type<tc>, window_params = [{transform_indices = @transform_0, window_bounds = array<i64: 32, 128>}, {pipeline_mode = #tpu.pipeline_mode<synchronous>, transform_indices = @transform_1, window_bounds = array<i64: 256, 1>}, {pipeline_mode = #tpu.pipeline_mode<synchronous>, transform_indices = @transform_2, window_bounds = array<i64: 256, 32>}, {transform_indices = @transform_3, window_bounds = array<i64: 1, 1, 128>}, {transform_indices = @transform_4, window_bounds = array<i64: 256, 1>}, {transform_indices = @transform_5, window_bounds = array<i64: 1, 1, 128>}]} {
    %c0 = arith.constant 0 : index
    %c0_0 = arith.constant 0 : index
    %0 = vector.load %arg2[%c0, %c0_0] : memref<32x128xf32, #tpu.memory_space<vmem>>, vector<32x128xf32>
    %1 = tpu.iota {dimensions = array<i32: 0>} : vector<64x128xi32>
    %cst = arith.constant 0x7F800000 : f32
    %2 = vector.broadcast %cst : f32 to vector<1x128xf32>
    %c256_i32 = arith.constant 256 : i32
    %3 = vector.broadcast %c256_i32 : i32 to vector<1x128xi32>
    %c0_i32 = arith.constant 0 : i32
    %c4_i32 = arith.constant 4 : i32
    %4 = arith.addi %c0_i32, %c4_i32 : i32
    %c1_i32 = arith.constant 1 : i32
    %5:2 = scf.for %arg8 = %c0_i32 to %4 step %c1_i32 iter_args(%arg9 = %2, %arg10 = %3) -> (vector<1x128xf32>, vector<1x128xi32>)  : i32 {
      %c64_i32_34 = arith.constant 64 : i32
      %71 = arith.muli %arg8, %c64_i32_34 : i32
      %72 = tpu.assume_multiple %71, 64 : i32
      %73 = arith.index_cast %72 : i32 to index
      %c0_35 = arith.constant 0 : index
      %74 = vector.load %arg4[%73, %c0_35] : memref<256x32xf32, #tpu.memory_space<vmem>>, vector<64x32xf32>
      %75 = arith.index_cast %72 : i32 to index
      %c0_36 = arith.constant 0 : index
      %76 = vector.load %arg3[%75, %c0_36] : memref<256x1xf32, #tpu.memory_space<vmem>>, vector<64x1xf32>
      %cst_37 = arith.constant dense<0.000000e+00> : vector<64x128xf32>
      %77 = tpu.matmul %74, %0, %cst_37 {dimension_numbers = #tpu.dot_dimension_numbers<[1], [0], [0], [1], [0, 0, 1, 1], [], []>} : vector<64x32xf32>, vector<32x128xf32>, vector<64x128xf32> -> vector<64x128xf32>
      %cst_38 = arith.constant 2.000000e+00 : f32
      %78 = vector.broadcast %cst_38 : f32 to vector<64x128xf32>
      %79 = arith.mulf %78, %77 : vector<64x128xf32>
      %80 = vector.broadcast %76 : vector<64x1xf32> to vector<64x128xf32>
      %81 = arith.subf %80, %79 : vector<64x128xf32>
      %cst_39 = arith.constant dense<0x7F800000> : vector<128xf32>
      %82 = vector.multi_reduction <minimumf>, %81, %cst_39 [0] : vector<64x128xf32> to vector<128xf32>
      %83 = vector.shape_cast %82 : vector<128xf32> to vector<1x128xf32>
      %84 = vector.broadcast %83 : vector<1x128xf32> to vector<64x128xf32>
      %85 = arith.cmpf oeq, %81, %84 : vector<64x128xf32>
      %c64_i32_40 = arith.constant 64 : i32
      %86 = vector.broadcast %c64_i32_40 : i32 to vector<64x128xi32>
      %87 = arith.select %85, %1, %86 : vector<64x128xi1>, vector<64x128xi32>
      %cst_41 = arith.constant dense<2147483647> : vector<128xi32>
      %88 = vector.multi_reduction <minsi>, %87, %cst_41 [0] : vector<64x128xi32> to vector<128xi32>
      %89 = vector.shape_cast %88 : vector<128xi32> to vector<1x128xi32>
      %c64_i32_42 = arith.constant 64 : i32
      %90 = arith.muli %arg8, %c64_i32_42 : i32
      %91 = vector.broadcast %90 : i32 to vector<1x128xi32>
      %92 = arith.addi %89, %91 : vector<1x128xi32>
      %93 = arith.cmpf olt, %83, %arg9 : vector<1x128xf32>
      %94 = arith.select %93, %83, %arg9 : vector<1x128xi1>, vector<1x128xf32>
      %95 = arith.select %93, %92, %arg10 : vector<1x128xi1>, vector<1x128xi32>
      scf.yield %94, %95 : vector<1x128xf32>, vector<1x128xi32>
    }
    %c4_i32_1 = arith.constant 4 : i32
    %6 = vector.shape_cast %5#1 : vector<1x128xi32> to vector<1x1x128xi32>
    %c0_2 = arith.constant 0 : index
    %c0_3 = arith.constant 0 : index
    %c0_4 = arith.constant 0 : index
    %7 = vector.load %arg5[%c0_2, %c0_3, %c0_4] : memref<1x1x128xi32, #tpu.memory_space<vmem>>, vector<1x1x128xi32>
    tpu.vector_store %arg5[%c0_2, %c0_3, %c0_4], %6 {strides = array<i32>} : memref<1x1x128xi32, #tpu.memory_space<vmem>>, vector<1x1x128xi32>,
    %c2_i32 = arith.constant 2 : i32
    %8 = arith.muli %arg0, %c2_i32 : i32
    %9 = arith.addi %8, %arg1 : i32
    %c128_i32 = arith.constant 128 : i32
    %10 = arith.muli %9, %c128_i32 : i32
    %11 = tpu.iota {dimensions = array<i32: 1>} : vector<1x128xi32>
    %12 = vector.broadcast %10 : i32 to vector<1x128xi32>
    %13 = arith.addi %12, %11 : vector<1x128xi32>
    %c320_i32 = arith.constant 320 : i32
    %14 = vector.broadcast %c320_i32 : i32 to vector<1x128xi32>
    %15 = arith.cmpi slt, %13, %14 : vector<1x128xi32>
    %c256_i32_5 = arith.constant 256 : i32
    %16 = vector.broadcast %c256_i32_5 : i32 to vector<1x128xi32>
    %17 = arith.select %15, %5#1, %16 : vector<1x128xi1>, vector<1x128xi32>
    %cst_6 = arith.constant 0.000000e+00 : f32
    %18 = vector.broadcast %cst_6 : f32 to vector<1x128xf32>
    %19 = arith.select %15, %5#0, %18 : vector<1x128xi1>, vector<1x128xf32>
    %c0_i32_7 = arith.constant 0 : i32
    %20 = arith.cmpi eq, %arg1, %c0_i32_7 : i32
    %21 = arith.extui %20 : i1 to i32
    %c0_i32_8 = arith.constant 0 : i32
    %22 = arith.cmpi ne, %21, %c0_i32_8 : i32
    scf.if %22 {
      %cst_34 = arith.constant 0.000000e+00 : f32
      %71 = vector.broadcast %cst_34 : f32 to vector<256x1xf32>
      %c0_35 = arith.constant 0 : index
      %c0_36 = arith.constant 0 : index
      %72 = vector.load %arg6[%c0_35, %c0_36] : memref<256x1xf32, #tpu.memory_space<vmem>>, vector<256x1xf32>
      tpu.vector_store %arg6[%c0_35, %c0_36], %71 {strides = array<i32>} : memref<256x1xf32, #tpu.memory_space<vmem>>, vector<256x1xf32>,
      %cst_37 = arith.constant 0.000000e+00 : f32
      %73 = vector.broadcast %cst_37 : f32 to vector<1x1x128xf32>
      %c0_38 = arith.constant 0 : index
      %c0_39 = arith.constant 0 : index
      %c0_40 = arith.constant 0 : index
      %74 = vector.load %arg7[%c0_38, %c0_39, %c0_40] : memref<1x1x128xf32, #tpu.memory_space<vmem>>, vector<1x1x128xf32>
      tpu.vector_store %arg7[%c0_38, %c0_39, %c0_40], %73 {strides = array<i32>} : memref<1x1x128xf32, #tpu.memory_space<vmem>>, vector<1x1x128xf32>,
    } else {
    }
    %c0_9 = arith.constant 0 : index
    %c0_10 = arith.constant 0 : index
    %c0_11 = arith.constant 0 : index
    %23 = vector.load %arg7[%c0_9, %c0_10, %c0_11] : memref<1x1x128xf32, #tpu.memory_space<vmem>>, vector<1x1x128xf32>
    %24 = vector.shape_cast %19 : vector<1x128xf32> to vector<1x1x128xf32>
    %25 = arith.addf %23, %24 : vector<1x1x128xf32>
    %c0_12 = arith.constant 0 : index
    %c0_13 = arith.constant 0 : index
    %c0_14 = arith.constant 0 : index
    %26 = vector.load %arg7[%c0_12, %c0_13, %c0_14] : memref<1x1x128xf32, #tpu.memory_space<vmem>>, vector<1x1x128xf32>
    tpu.vector_store %arg7[%c0_12, %c0_13, %c0_14], %25 {strides = array<i32>} : memref<1x1x128xf32, #tpu.memory_space<vmem>>, vector<1x1x128xf32>,
    %c0_i32_15 = arith.constant 0 : i32
    %27 = vector.broadcast %c0_i32_15 : i32 to vector<1x128xi32>
    %28 = arith.subi %17, %27 : vector<1x128xi32>
    %29 = vector.broadcast %28 : vector<1x128xi32> to vector<64x128xi32>
    %30 = arith.cmpi eq, %1, %29 : vector<64x128xi32>
    %31 = arith.extui %30 : vector<64x128xi1> to vector<64x128xi32>
    %32 = arith.sitofp %31 : vector<64x128xi32> to vector<64x128xf32>
    %c0_16 = arith.constant 0 : index
    %c0_17 = arith.constant 0 : index
    %33 = vector.load %arg6[%c0_16, %c0_17] : memref<256x1xf32, #tpu.memory_space<vmem>>, vector<64x1xf32>
    %cst_18 = arith.constant dense<0.000000e+00> : vector<64xf32>
    %34 = vector.multi_reduction <add>, %32, %cst_18 [1] : vector<64x128xf32> to vector<64xf32>
    %35 = vector.shape_cast %34 : vector<64xf32> to vector<64x1xf32>
    %36 = arith.addf %33, %35 : vector<64x1xf32>
    %c0_19 = arith.constant 0 : index
    %c0_20 = arith.constant 0 : index
    %37 = vector.load %arg6[%c0_19, %c0_20] : memref<256x1xf32, #tpu.memory_space<vmem>>, vector<64x1xf32>
    tpu.vector_store %arg6[%c0_19, %c0_20], %36 {strides = array<i32>} : memref<256x1xf32, #tpu.memory_space<vmem>>, vector<64x1xf32>,
    %c64_i32 = arith.constant 64 : i32
    %38 = vector.broadcast %c64_i32 : i32 to vector<1x128xi32>
    %39 = arith.subi %17, %38 : vector<1x128xi32>
    %40 = vector.broadcast %39 : vector<1x128xi32> to vector<64x128xi32>
    %41 = arith.cmpi eq, %1, %40 : vector<64x128xi32>
    %42 = arith.extui %41 : vector<64x128xi1> to vector<64x128xi32>
    %43 = arith.sitofp %42 : vector<64x128xi32> to vector<64x128xf32>
    %c64 = arith.constant 64 : index
    %c0_21 = arith.constant 0 : index
    %44 = vector.load %arg6[%c64, %c0_21] : memref<256x1xf32, #tpu.memory_space<vmem>>, vector<64x1xf32>
    %cst_22 = arith.constant dense<0.000000e+00> : vector<64xf32>
    %45 = vector.multi_reduction <add>, %43, %cst_22 [1] : vector<64x128xf32> to vector<64xf32>
    %46 = vector.shape_cast %45 : vector<64xf32> to vector<64x1xf32>
    %47 = arith.addf %44, %46 : vector<64x1xf32>
    %c64_23 = arith.constant 64 : index
    %c0_24 = arith.constant 0 : index
    %48 = vector.load %arg6[%c64_23, %c0_24] : memref<256x1xf32, #tpu.memory_space<vmem>>, vector<64x1xf32>
    tpu.vector_store %arg6[%c64_23, %c0_24], %47 {strides = array<i32>} : memref<256x1xf32, #tpu.memory_space<vmem>>, vector<64x1xf32>,
    %c128_i32_25 = arith.constant 128 : i32
    %49 = vector.broadcast %c128_i32_25 : i32 to vector<1x128xi32>
    %50 = arith.subi %17, %49 : vector<1x128xi32>
    %51 = vector.broadcast %50 : vector<1x128xi32> to vector<64x128xi32>
    %52 = arith.cmpi eq, %1, %51 : vector<64x128xi32>
    %53 = arith.extui %52 : vector<64x128xi1> to vector<64x128xi32>
    %54 = arith.sitofp %53 : vector<64x128xi32> to vector<64x128xf32>
    %c128 = arith.constant 128 : index
    %c0_26 = arith.constant 0 : index
    %55 = vector.load %arg6[%c128, %c0_26] : memref<256x1xf32, #tpu.memory_space<vmem>>, vector<64x1xf32>
    %cst_27 = arith.constant dense<0.000000e+00> : vector<64xf32>
    %56 = vector.multi_reduction <add>, %54, %cst_27 [1] : vector<64x128xf32> to vector<64xf32>
    %57 = vector.shape_cast %56 : vector<64xf32> to vector<64x1xf32>
    %58 = arith.addf %55, %57 : vector<64x1xf32>
    %c128_28 = arith.constant 128 : index
    %c0_29 = arith.constant 0 : index
    %59 = vector.load %arg6[%c128_28, %c0_29] : memref<256x1xf32, #tpu.memory_space<vmem>>, vector<64x1xf32>
    tpu.vector_store %arg6[%c128_28, %c0_29], %58 {strides = array<i32>} : memref<256x1xf32, #tpu.memory_space<vmem>>, vector<64x1xf32>,
    %c192_i32 = arith.constant 192 : i32
    %60 = vector.broadcast %c192_i32 : i32 to vector<1x128xi32>
    %61 = arith.subi %17, %60 : vector<1x128xi32>
    %62 = vector.broadcast %61 : vector<1x128xi32> to vector<64x128xi32>
    %63 = arith.cmpi eq, %1, %62 : vector<64x128xi32>
    %64 = arith.extui %63 : vector<64x128xi1> to vector<64x128xi32>
    %65 = arith.sitofp %64 : vector<64x128xi32> to vector<64x128xf32>
    %c192 = arith.constant 192 : index
    %c0_30 = arith.constant 0 : index
    %66 = vector.load %arg6[%c192, %c0_30] : memref<256x1xf32, #tpu.memory_space<vmem>>, vector<64x1xf32>
    %cst_31 = arith.constant dense<0.000000e+00> : vector<64xf32>
    %67 = vector.multi_reduction <add>, %65, %cst_31 [1] : vector<64x128xf32> to vector<64xf32>
    %68 = vector.shape_cast %67 : vector<64xf32> to vector<64x1xf32>
    %69 = arith.addf %66, %68 : vector<64x1xf32>
    %c192_32 = arith.constant 192 : index
    %c0_33 = arith.constant 0 : index
    %70 = vector.load %arg6[%c192_32, %c0_33] : memref<256x1xf32, #tpu.memory_space<vmem>>, vector<64x1xf32>
    tpu.vector_store %arg6[%c192_32, %c0_33], %69 {strides = array<i32>} : memref<256x1xf32, #tpu.memory_space<vmem>>, vector<64x1xf32>,
    return
  }
  func.func @transform_0(%arg0: i32, %arg1: i32) -> (i32, i32) {
    %c2_i32 = arith.constant 2 : i32
    %0 = arith.muli %arg0, %c2_i32 : i32
    %1 = arith.addi %0, %arg1 : i32
    %c0_i32 = arith.constant 0 : i32
    %c0_i32_0 = arith.constant 0 : i32
    return %c0_i32, %1 : i32, i32
  }
  func.func @transform_1(%arg0: i32, %arg1: i32) -> (i32, i32) {
    %c0_i32 = arith.constant 0 : i32
    %c0_i32_0 = arith.constant 0 : i32
    %c0_i32_1 = arith.constant 0 : i32
    return %c0_i32, %c0_i32_0 : i32, i32
  }
  func.func @transform_2(%arg0: i32, %arg1: i32) -> (i32, i32) {
    %c0_i32 = arith.constant 0 : i32
    %c0_i32_0 = arith.constant 0 : i32
    %c0_i32_1 = arith.constant 0 : i32
    return %c0_i32, %c0_i32_0 : i32, i32
  }
  func.func @transform_3(%arg0: i32, %arg1: i32) -> (i32, i32, i32) {
    %c2_i32 = arith.constant 2 : i32
    %0 = arith.muli %arg0, %c2_i32 : i32
    %1 = arith.addi %0, %arg1 : i32
    %c0_i32 = arith.constant 0 : i32
    %c0_i32_0 = arith.constant 0 : i32
    %c0_i32_1 = arith.constant 0 : i32
    return %1, %c0_i32, %c0_i32_0 : i32, i32, i32
  }
  func.func @transform_4(%arg0: i32, %arg1: i32) -> (i32, i32) {
    %c0_i32 = arith.constant 0 : i32
    %c0_i32_0 = arith.constant 0 : i32
    return %arg0, %c0_i32 : i32, i32
  }
  func.func @transform_5(%arg0: i32, %arg1: i32) -> (i32, i32, i32) {
    %c0_i32 = arith.constant 0 : i32
    %c0_i32_0 = arith.constant 0 : i32
    %c0_i32_1 = arith.constant 0 : i32
    return %arg0, %c0_i32, %c0_i32_0 : i32, i32, i32
  }
}

</mosaic_0001>

<bundles_post_ra>
// kernel: tpu_custom_call.1
= control target key start
LH: loop header
LB: loop body
LE: loop exit
PB: predicated region body
PF: predicated region fallthrough
CT: control target
= control target key end

     0   :  { %s2147_s0 = inlined_call_operand.vmem [shape: f32[32,512], index: 0, kind: input, shape index: {}]   ;;  %s2148_s1 = inlined_call_operand.vmem [shape: f32[256,1], index: 1, kind: input, shape index: {}]   ;;  %s2149_s2 = inlined_call_operand.vmem [shape: f32[256,32], index: 2, kind: input, shape index: {}]   ;;  %s2150_s3 = inlined_call_operand.hbm [shape: s32[4,1,128], index: 3, kind: output, shape index: {0}]   ;;  %s2151_s4 = inlined_call_operand.vmem [shape: f32[512,1], index: 4, kind: output, shape index: {1}]   ;;  %s2152_s5 = inlined_call_operand.hbm [shape: f32[2,1,128], index: 5, kind: output, shape index: {2}]  }
   0x1   :  { %2159 = sst [smem:[#allocation13_spill]] %s2147_s0 }
   0x2   :  { %2160 = sst [smem:[#allocation14_spill]] %s2148_s1 }
   0x3   :  { %2161 = sst [smem:[#allocation15_spill]] %s2149_s2 }
   0x4   :  { %2162 = sst [smem:[#allocation16_spill]] %s2150_s3 }
   0x5   :  { %2163 = sst [smem:[#allocation17_spill]] %s2151_s4 }
   0x6   :  { %2164 = sst [smem:[#allocation18_spill]] %s2152_s5 }
   0x7   :  { %11 = vsyncpa [#allocation4], 0 }
   0x8   :  { %13 = vsyncpa [#allocation4 + $0x1], 0 }
   0x9   :  { %14 = vsyncpa [#allocation6], 0 }
   0xa   :  { %16 = vsyncpa [#allocation6 + $0x1], 0  ;;  %s1548_s18 = smov 0   ;;  %s1550_s19 = smov 0  }
   0xb   :  { %s1552_s20 = smov 0   ;;  %s1554_s21 = smov 0  }
   0xc   :  { %s1556_s22 = smov 0   ;;  %s1558_s23 = smov 0  }
   0xd   :  { %s1560_s24 = smov 0   ;;  %s1562_s25 = smov 0  }
   0xe   :  { %s1564_s26 = smov 0   ;;  %s1566_s27 = smov 0  }
   0xf   :  { %s1568_s28 = smov 0  }
  0x10 LB: > { %2165 = sst [smem:[#allocation9_spill]] %s1471_s21  ;;  %s1097_s29 = sadd.s32 4294967295, %s1499_s28   ;;  %s1499_s28 = sphi %s1568_s28, %s22_s28   ;;  %s1495_s27 = sphi %s1566_s27, %s2199_s27   ;;  %s1491_s26 = sphi %s1564_s26, %s2190_s26   ;;  %s1487_s25 = sphi %s1562_s25, %s2198_s25   ;;  %s1483_s24 = sphi %s1560_s24, %s2189_s24   ;;  %s1479_s23 = sphi %s1558_s23, %s2197_s23   ;;  %s1475_s22 = sphi %s1556_s22, %s2196_s22   ;;  %s1471_s21 = sphi %s1554_s21, %s2195_s21   ;;  %s1467_s20 = sphi %s1552_s20, %s2194_s20   ;;  %s1463_s19 = sphi %s1550_s19, %s2193_s19   ;;  %s1459_s18 = sphi %s1548_s18, %s2192_s18  }
  0x11   : > { %2166 = sst [smem:[#allocation10_spill]] %s1491_s26  ;;  %s1098_s30 = sadd.s32 4294967294, %s1499_s28  }
  0x12   : > { %s31_s6 = sadd.s32 1, %s1491_s26  ;;  %s34_s7 = sadd.s32 1, %s1495_s27 }
  0x13   : > { %p32_p0 = scmp.ge.s32.totalorder %s31_s6, 2  ;;  %s1099_s8 = sshll.u32 %s1495_s27, 1 }
  0x14   : > { %s1609_s9 = sadd.s32 %s1491_s26, %s1099_s8  ;;  %s45_s10 = sadd.s32 1, %s1479_s23 }
  0x15   : > { %s2201_s6 = smov (%p32_p0, %s31_s6), 0  ;;  %s2203_s7 = smov (!%p32_p0, %s34_s7), %s1495_s27 }
  0x16   : > { %2167 = sst [smem:[#allocation11_spill]] %s2201_s6  ;;  %p52_p1 = scmp.ne.s32.totalorder %s1479_s23, %s1475_s22 }
  0x17   : > { %p53_p2 = scmp.eq.s32.totalorder %s1499_s28, 0  ;;  %p36_p3 = scmp.ge.s32.totalorder %s2203_s7, 2 }
  0x18   : > { %p1618_p4 = scmp.eq.s32.totalorder %s1097_s29, 3  ;;  %p133_p6 = scmp.ne.s32.totalorder %s1475_s22, %s1471_s21 }
  0x19   : > { %p1622_p5 = por %p53_p2, %p52_p1  ;;  %s2205_s7 = smov (%p36_p3, %s2203_s7), 0 }
  0x1a   : > { %2170 = sst [smem:[#allocation12_spill]] %s2205_s7  ;;  %p1632_p7 = por %p1618_p4, %p52_p1 }
  0x1b   : > { %p1636_p8 = scmp.eq.s32.totalorder %s1098_s30, 3  ;;  %s1100_s15 = sshll.u32 %s2205_s7, 1 }
  0x1c   : > { %s166_s16 = ssub.s32 %s1495_s27, %s2205_s7  ;;  %s41_s17 = sadd.s32 %s1100_s15, %s2201_s6 }
  0x1d   : > { %p1646_p9 = por %p1636_p8, %p133_p6  ;;  %s42_s8 = ssub.s32 %s1609_s9, %s41_s17 }
  0x1e   : > { %p167_p10 = scmp.eq.s32.totalorder %s166_s16, 0  ;;  %p43_p11 = scmp.eq.s32.totalorder %s42_s8, 0 }
  0x1f   : > { %s169_s26 = sadd.s32 1, %s1467_s20  ;;  %p179_p12 = scmp.ne.s32.totalorder %s1467_s20, %s1463_s19 }
  0x20   : > { %s1653_s21 = scalar_select %p167_p10, %s1467_s20, %s169_s26  }
  0x21   : > { %s1656_s30 = scalar_select %p43_p11, %s1479_s23, %s45_s10  }
  0x22   : > { %p185_p13 = scmp.ne.s32.totalorder %s1463_s19, %s1459_s18  ;;  %p1664_p0 = por %p179_p12, %p1618_p4 }
  0x23   : > { %p1104_p2 = scmp.ge.s32.totalorder %s1499_s28, 4 }
  0x24   : > { %p1670_p1 = por %p185_p13, %p1636_p8 }
  0x25   : > { %208 = sbr.rel (%p1104_p2) target bundleno = 58 (0x3a), region = 24 }
  0x2c   : > { %211 = sbr.rel (!%p1622_p5) target bundleno = 58 (0x3a), region = 28  ;;  %s213_s26 = sand.u32 (%p1622_p5), 1, %s1479_s23  }
  0x2d   : > { %s1107_s10 = sshll.u32 (%p1622_p5), %s1609_s9, 3  ;;  %s1105_s11 = sshll.u32 (%p1622_p5), %s213_s26, 5 }
  0x2e   : > { %s2176_s0 = sld [smem:[#allocation13_spill]] (%p1622_p5)  ;;  %s215_s14 = scalar_lea.vmem (%p1622_p5), [#allocation2], %s1105_s11 }
  0x34   : > { %s219_s8 = scalar_lea.vmem %s2176_s0, %s1107_s10 }
  0x35   : > { %v253_v0 = vld [vmem:[%s219_s8] sm:$0xff] }
  0x36   : > { %v255_v1 = vld [vmem:[%s219_s8 + $0x20] sm:$0xff]  ;;  %254 = vst [vmem:[%s215_s14] sm:$0xff] %v253_v0 }
  0x37   : > { %v257_v2 = vld [vmem:[%s219_s8 + $0x40] sm:$0xff]  ;;  %256 = vst [vmem:[%s215_s14 + $0x8] sm:$0xff] %v255_v1 }
  0x38   : > { %258 = vst [vmem:[%s215_s14 + $0x10] sm:$0xff] %v257_v2  ;;  %v259_v3 = vld [vmem:[%s219_s8 + $0x60] sm:$0xff] }
  0x39   : > { %260 = vst [vmem:[%s215_s14 + $0x18] sm:$0xff] %v259_v3 }
  0x3a PF: > { %p1108_p3 = scmp.ge.s32.totalorder %s1499_s28, 1  ;;  %p265_p4 = scmp.lt.s32.totalorder %s1499_s28, 5 }
  0x3c   : > { %p266_p5 = pnand %p1108_p3, %p265_p4 }
  0x3d   : > { %s1685_s9 = sand.u32 (!%p266_p5), 1, %s1475_s22   ;;  %s2156_s12 = sand.u32 (!%p266_p5), 1, %s1463_s19   ;;  %v321_v4 = vlaneseq (!%p266_p5)  ;;  %v1732_v17 = vmov (!%p266_p5), 256   ;;  %v1734_v18 = vmov (!%p266_p5), inf  }
  0x3e   : > { %269 = sbr.rel (%p266_p5) target bundleno = 573 (0x23d), region = 66  ;;  %s1109_s26 = sshll.u32 (!%p266_p5), %s1685_s9, 5 }
  0x3f   : > { %v1690_v5 = vshrl.u32 (!%p266_p5), %v321_v4, 7  ;;  %s1110_s10 = sshll.u32 (!%p266_p5), %s1487_s25, 5  ;;  %s274_s11 = scalar_lea.vmem (!%p266_p5), [#allocation2], %s1109_s26 }
  0x40   : > { %v1693_v6 = vld [vmem:[%s274_s11] sm:$0xff] (!%p266_p5)  ;;  %v1695_v7 = vld [vmem:[%s274_s11 + $0x8] sm:$0xff] (!%p266_p5)  ;;  %v1697_v8 = vld [vmem:[%s274_s11 + $0x10] sm:$0xff] (!%p266_p5)  ;;  %p312_p6 = scmp.lt.s32.totalorder (!%p266_p5), %s1110_s10, 63  ;;  %s2177_s4 = sld [smem:[#allocation17_spill]] (!%p266_p5) }
  0x41   : > { %v1699_v9 = vld [vmem:[%s274_s11 + $0x18] sm:$0xff] (!%p266_p5)  ;;  %v1702_v10 = vadd.s32 (!%p266_p5), 8, %v1690_v5  ;;  %v1705_v11 = vadd.s32 (!%p266_p5), 16, %v1690_v5  ;;  %v1708_v12 = vadd.s32 (!%p266_p5), 24, %v1690_v5  ;;  %v1711_v13 = vadd.s32 (!%p266_p5), 32, %v1690_v5  ;;  %s1730_s11 = scalar_lea.vmem (!%p266_p5), [#allocation5], %s2156_s12 }
  0x42   : > { %v1714_v14 = vadd.s32 (!%p266_p5), 40, %v1690_v5  ;;  %v1717_v15 = vadd.s32 (!%p266_p5), 48, %v1690_v5  ;;  %v1720_v16 = vadd.s32 (!%p266_p5), 56, %v1690_v5  ;;  %s1736_s0 = smov (!%p266_p5), 0  }
  0x45   : > { %s2207_s10 = smov (!%p312_p6, %s1110_s10), 63 }
  0x46   : > { %s1111_s16 = sshll.u32 %s2207_s10, 3 }
  0x47   : > { %s1725_s14 = scalar_lea.vmem %s2177_s4, %s1111_s16 }
  0x48 LB: >> { %v1196_v19 = vpack.c.bf16 %v1695_v7, %v1693_v6  ;;  %v1200_v20 = vpack.c.bf16 %v1699_v9, %v1697_v8  ;;  %v1513_v21 = vmov 0   ;;  %s1752_s10 = sshll.u32 %s1511_s0, 6  ;;  %vm357_vm0 = vcmask 261120   ;;  %s2178_s2 = sld [smem:[#allocation15_spill]]  ;;  %s1511_s0 = sphi %s1736_s0, %s335_s0   ;;  %v1507_v18 = vphi %v1734_v18, %v2181_v18   ;;  %v1503_v17 = vphi %v1732_v17, %v2180_v17  }
  0x49   : >> { %1336 = vset.pattern.permute.xlu1 %v1513_v21  ;;  %1335 = vset.pattern.permute.xlu0 %v1513_v21  ;;  %s2179_s1 = sld [smem:[#allocation14_spill]]  ;;  %s335_s0 = sadd.s32 1, %s1511_s0  }
  0x4a   : >> { %1197 = vmatprep.subr.bf16.mxu0 %v1196_v19  ;;  %1204 = vmatprep.subr.bf16.mxu1 %v1196_v19  ;;  %p332_p8 = scmp.ge.s32.totalorder %s335_s0, 4  }
  0x4b   : >> { %1199 = vmatpush3.bf16.msra.mxu0 %v1196_v19  ;;  %1206 = vmatpush3.bf16.msra.mxu1 %v1196_v19  ;;  %s1121_s12 = sshll.u32 (%p332_p8), %s1487_s25, 1  ;;  %p1123_p10 = scmp.ne.s32.totalorder (%p332_p8), %s1483_s24, 0 }
  0x4c   : >> { %1201 = vmatprep.subr.bf16.mxu0 %v1200_v20  ;;  %1205 = vmatprep.subr.bf16.mxu1 %v1200_v20  ;;  %s1808_s26 = sadd.s32 (%p332_p8), %s1483_s24, %s1121_s12 }
  0x4e   : >> { %s339_s8 = scalar_lea.vmem %s2178_s2, %s1752_s10 }
  0x4f   : >> { %s1762_s4 = scalar_lea.vmem %s2179_s1, %s1752_s10  ;;  %v340_v22 = vld [vmem:[%s339_s8] sm:$0xff]  ;;  %1203 = vmatpush3.bf16.msra.mxu0 %v1200_v20  ;;  %1207 = vmatpush3.bf16.msra.mxu1 %v1200_v20  ;;  %v341_v25 = vld [vmem:[%s339_s8 + $0x8] sm:$0xff]  ;;  %v342_v28 = vld [vmem:[%s339_s8 + $0x10] sm:$0xff] }
  0x50   : >> { %v344_v23 = vld [vmem:[%s339_s8 + $0x20] sm:$0xff]  ;;  %1184 = vmatprep.mubr.msk.f32.mxu0 %vm357_vm0, %v340_v22  ;;  %v351_v24 = vld [vmem:[%s1762_s4 + $0x10] sm:$0xff]  ;;  %v345_v26 = vld [vmem:[%s339_s8 + $0x28] sm:$0xff] }
  0x51   : >> { %1190 = vmatprep.mubr.msk.f32.mxu1 %vm357_vm0, %v344_v23  ;;  %v349_v27 = vld [vmem:[%s1762_s4] sm:$0xff]  ;;  %v346_v29 = vld [vmem:[%s339_s8 + $0x30] sm:$0xff]  ;;  %507 = vperm.xlu1 %1336, %v351_v24   ;;  %v352_v30 = vld [vmem:[%s1762_s4 + $0x18] sm:$0xff] }
  0x52   : >> { %497 = vperm.xlu0 %1335, %v349_v27   ;;  %v350_v31 = vld [vmem:[%s1762_s4 + $0x8] sm:$0xff]  ;;  %1185 = vmatmul.mubr.msk.f32.vlgmr.msra.gmra.mrb[0].mxu0 %vm357_vm0, %v341_v25  ;;  %v343_v32 = vld [vmem:[%s339_s8 + $0x18] sm:$0xff]  ;;  %v353_v35 = vld [vmem:[%s1762_s4 + $0x20] sm:$0xff] }
  0x53   : >> { %1191 = vmatmul.mubr.msk.f32.vlgmr.msra.gmra.mrb[0].mxu1 %vm357_vm0, %v345_v26  ;;  %1187 = vmatprep.mubr.msk.f32.mxu0 %vm357_vm0, %v342_v28  ;;  %v347_v33 = vld [vmem:[%s339_s8 + $0x38] sm:$0xff]  ;;  %v354_v34 = vld [vmem:[%s1762_s4 + $0x28] sm:$0xff]  ;;  %v355_v37 = vld [vmem:[%s1762_s4 + $0x30] sm:$0xff] }
  0x54   : >> { %1193 = vmatprep.mubr.msk.f32.mxu1 %vm357_vm0, %v346_v29  ;;  %v356_v36 = vld [vmem:[%s1762_s4 + $0x38] sm:$0xff]  ;;  %s2182_s4 = scalar_lea.vmem (%p332_p8), [#allocation3], %s1685_s9 }
  0x55   : >> { %512 = vperm.xlu1 %1336, %v352_v30  }
  0x56   : >> { %502 = vperm.xlu0 %1335, %v350_v31   ;;  %1188 = vmatmul.mubr.msk.f32.gmra.mrb[2].mxu0 %vm357_vm0, %v343_v32 }
  0x57   : >> { %1194 = vmatmul.mubr.msk.f32.gmra.mrb[2].mxu1 %vm357_vm0, %v347_v33 }
  0x59   : >> { %522 = vperm.xlu1 %1336, %v354_v34  }
  0x5a   : >> { %517 = vperm.xlu0 %1335, %v353_v35  }
  0x5d   : >> { %532 = vperm.xlu1 %1336, %v356_v36  }
  0x5e   : >> { %527 = vperm.xlu0 %1335, %v355_v37  }
  0xd0   : >> { %v508_v38 = vpop.permute.xlu1 %507 }
  0xd1   : >> { %v498_v39 = vpop.permute.xlu0 %497 }
  0xd4   : >> { %v513_v40 = vpop.permute.xlu1 %512 }
  0xd5   : >> { %v503_v41 = vpop.permute.xlu0 %502 }
  0xd8   : >> { %v523_v42 = vpop.permute.xlu1 %522 }
  0xd9   : >> { %v518_v43 = vpop.permute.xlu0 %517 }
  0xdc   : >> { %v533_v63 = vpop.permute.xlu1 %532 }
  0xdd   : >> { %v528_v3 = vpop.permute.xlu0 %527 }
 0x125   : >> { %v1186_v44 = vpop.f32.mrb[0].mxu0 }
 0x126   : >> { %v1192_v45 = vpop.f32.mrb[0].mxu1  ;;  %v488_v46 = vmul.f32 2.0, %v1186_v44  ;;  %v448_v48 = vpop.f32.mrb[1].mxu0 }
 0x127   : >> { %v492_v47 = vmul.f32 2.0, %v1192_v45  ;;  %v468_v49 = vpop.f32.mrb[1].mxu1  ;;  %v487_v50 = vmul.f32 2.0, %v448_v48 }
 0x128   : >> { %v491_v51 = vmul.f32 2.0, %v468_v49  ;;  %v536_v52 = vsub.f32 %v503_v41, %v488_v46 }
 0x129   : >> { %v540_v53 = vsub.f32 %v523_v42, %v492_v47  ;;  %v535_v54 = vsub.f32 %v498_v39, %v487_v50  ;;  %v1189_v56 = vpop.f32.mrb[2].mxu0 }
 0x12a   : >> { %v539_v55 = vsub.f32 %v518_v43, %v491_v51  ;;  %v1195_v57 = vpop.f32.mrb[2].mxu1  ;;  %v490_v59 = vmul.f32 2.0, %v1189_v56  ;;  %v458_v61 = vpop.f32.mrb[3].mxu0 }
 0x12b   : >> { %v544_v58 = vmin.f32 %v536_v52, %v540_v53  ;;  %v494_v60 = vmul.f32 2.0, %v1195_v57  ;;  %v478_v62 = vpop.f32.mrb[3].mxu1  ;;  %v489_v1 = vmul.f32 2.0, %v458_v61 }
 0x12c   : >> { %v543_v0 = vmin.f32 %v535_v54, %v539_v55  ;;  %v493_v2 = vmul.f32 2.0, %v478_v62  ;;  %v538_v19 = vsub.f32 %v513_v40, %v490_v59  ;;  %v605_v59 = vand.u32 (%p332_p8), 127, %v321_v4 }
 0x12d   : >> { %v542_v20 = vsub.f32 %v533_v63, %v494_v60  ;;  %v537_v22 = vsub.f32 %v508_v38, %v489_v1 }
 0x12e   : >> { %v547_v21 = vmin.f32 %v543_v0, %v544_v58  ;;  %v541_v23 = vsub.f32 %v528_v3, %v493_v2 }
 0x12f   : >> { %v546_v24 = vmin.f32 %v538_v19, %v542_v20 }
 0x130   : >> { %v545_v25 = vmin.f32 %v537_v22, %v541_v23 }
 0x132   : >> { %v548_v26 = vmin.f32 %v545_v25, %v546_v24 }
 0x134   : >> { %v549_v27 = vmin.f32 %v547_v21, %v548_v26 }
 0x136   : >> { %v550_v28 = vrot.slane %v549_v27, 4 }
 0x138   : >> { %v551_v29 = vmin.f32 %v549_v27, %v550_v28 }
 0x13a   : >> { %v552_v30 = vrot.slane %v551_v29, 2 }
 0x13c   : >> { %v553_v31 = vmin.f32 %v551_v29, %v552_v30 }
 0x13e   : >> { %v554_v32 = vrot.slane %v553_v31, 1 }
 0x140   : >> { %v555_v33 = vmin.f32 %v553_v31, %v554_v32 }
 0x142   : >> { %vm556_vm1 = vcmp.eq.f32.partialorder %v535_v54, %v555_v33  ;;  %vm557_vm2 = vcmp.eq.f32.partialorder %v536_v52, %v555_v33  ;;  %vm558_vm3 = vcmp.eq.f32.partialorder %v537_v22, %v555_v33  ;;  %vm559_vm4 = vcmp.eq.f32.partialorder %v538_v19, %v555_v33 }
 0x143   : >> { %vm560_vm5 = vcmp.eq.f32.partialorder %v539_v55, %v555_v33  ;;  %vm561_vm6 = vcmp.eq.f32.partialorder %v540_v53, %v555_v33  ;;  %vm562_vm7 = vcmp.eq.f32.partialorder %v541_v23, %v555_v33  ;;  %vm563_vm8 = vcmp.eq.f32.partialorder %v542_v20, %v555_v33 }
 0x144   : >> { %v564_v34 = vsel %vm556_vm1, %v1690_v5, 64  ;;  %v565_v35 = vsel %vm557_vm2, %v1702_v10, 64  ;;  %v566_v36 = vsel %vm558_vm3, %v1705_v11, 64  ;;  %v567_v37 = vsel %vm559_vm4, %v1708_v12, 64 }
 0x145   : >> { %v568_v38 = vsel %vm560_vm5, %v1711_v13, 64  ;;  %v569_v39 = vsel %vm561_vm6, %v1714_v14, 64  ;;  %v570_v40 = vsel %vm562_vm7, %v1717_v15, 64  ;;  %v571_v41 = vsel %vm563_vm8, %v1720_v16, 64 }
 0x146   : >> { %vm572_vm9 = vcmp.lt.s32.totalorder %v564_v34, %v568_v38  ;;  %vm574_vm10 = vcmp.lt.s32.totalorder %v565_v35, %v569_v39  ;;  %vm576_vm11 = vcmp.lt.s32.totalorder %v566_v36, %v570_v40  ;;  %vm578_vm12 = vcmp.lt.s32.totalorder %v567_v37, %v571_v41 }
 0x147   : >> { %v573_v42 = vsel %vm572_vm9, %v564_v34, %v568_v38  ;;  %v575_v43 = vsel %vm574_vm10, %v565_v35, %v569_v39  ;;  %v577_v44 = vsel %vm576_vm11, %v566_v36, %v570_v40  ;;  %v579_v45 = vsel %vm578_vm12, %v567_v37, %v571_v41 }
 0x148   : >> { %vm580_vm13 = vcmp.lt.s32.totalorder %v573_v42, %v575_v43  ;;  %vm582_vm14 = vcmp.lt.s32.totalorder %v577_v44, %v579_v45  ;;  %vm597_vm15 = vcmp.lt.f32.partialorder %v555_v33, %v1507_v18  ;;  %v595_v55 = vstv %s1752_s10  ;;  %s1122_s10 = sshll.u32 (%p332_p8), %s1808_s26, 7 }
 0x149   : >> { %v581_v46 = vsel %vm580_vm13, %v573_v42, %v575_v43  ;;  %v583_v47 = vsel %vm582_vm14, %v577_v44, %v579_v45  ;;  %v598_v48 = vsel %vm597_vm15, %v555_v33, %v1507_v18  }
 0x14a   : >> { %vm584_vm0 = vcmp.lt.s32.totalorder %v581_v46, %v583_v47  ;;  %v2181_v18 = vmov %v598_v48 }
 0x14b   : >> { %v585_v49 = vsel %vm584_vm0, %v581_v46, %v583_v47  ;;  %v606_v18 = vstv (%p332_p8), %s1122_s10 }
 0x14c   : >> { %v586_v50 = vrot.slane %v585_v49, 4  ;;  %v607_v60 = vadd.s32 (%p332_p8), %v606_v18, %v605_v59 }
 0x14e   : >> { %vm587_vm1 = vcmp.lt.s32.totalorder %v585_v49, %v586_v50  ;;  %vm608_vm4 = vcmp.lt.s32.totalorder (%p332_p8), %v607_v60, 320 }
 0x14f   : >> { %v588_v51 = vsel %vm587_vm1, %v585_v49, %v586_v50  ;;  %v1813_v62 = vsel (%p332_p8), %vm608_vm4, %v598_v48, 0.0 }
 0x150   : >> { %v589_v52 = vrot.slane %v588_v51, 2 }
 0x152   : >> { %vm590_vm2 = vcmp.lt.s32.totalorder %v588_v51, %v589_v52 }
 0x153   : >> { %v591_v53 = vsel %vm590_vm2, %v588_v51, %v589_v52 }
 0x154   : >> { %v592_v54 = vrot.slane %v591_v53, 1 }
 0x155   : > { %334 = sbr.rel (!%p332_p8) target bundleno = 72 (0x48), region = 152 }
 0x156   : >> { %vm593_vm3 = vcmp.lt.s32.totalorder %v591_v53, %v592_v54 }
 0x157   : >> { %v594_v56 = vsel %vm593_vm3, %v591_v53, %v592_v54 }
 0x158   : >> { %v596_v57 = vadd.s32 %v595_v55, %v594_v56 }
 0x15a   : >> { %v599_v58 = vsel %vm597_vm15, %v596_v57, %v1503_v17  }
 0x15b   : >> { %v2180_v17 = vmov %v599_v58  ;;  %600 = vst [vmem:[%s2182_s4] sm:$0x1] (%p332_p8), %v599_v58  ;;  %v1811_v61 = vsel (%p332_p8), %vm608_vm4, %v599_v58, 256 }
 0x15c   : > { %614 = sbr.rel (%p1123_p10) target bundleno = 366 (0x16e), region = 81  ;;  %vm615_vm5 = vcmask (!%p1123_p10), 7168   ;;  %v1514_v4 = vmov (!%p1123_p10), 0.0  }
 0x15d   : > { %616 = vst.msk [vmem:[%s1725_s14] sm:$0xff] (!%p1123_p10), %vm615_vm5, %v1514_v4  ;;  %617 = vst.msk [vmem:[%s1725_s14 + $0x8] sm:$0xff] (!%p1123_p10), %vm615_vm5, %v1514_v4 }
 0x15e   : > { %618 = vst.msk [vmem:[%s1725_s14 + $0x10] sm:$0xff] (!%p1123_p10), %vm615_vm5, %v1514_v4  ;;  %619 = vst.msk [vmem:[%s1725_s14 + $0x18] sm:$0xff] (!%p1123_p10), %vm615_vm5, %v1514_v4 }
 0x15f   : > { %620 = vst.msk [vmem:[%s1725_s14 + $0x20] sm:$0xff] (!%p1123_p10), %vm615_vm5, %v1514_v4  ;;  %621 = vst.msk [vmem:[%s1725_s14 + $0x28] sm:$0xff] (!%p1123_p10), %vm615_vm5, %v1514_v4 }
 0x160   : > { %622 = vst.msk [vmem:[%s1725_s14 + $0x30] sm:$0xff] (!%p1123_p10), %vm615_vm5, %v1514_v4  ;;  %623 = vst.msk [vmem:[%s1725_s14 + $0x38] sm:$0xff] (!%p1123_p10), %vm615_vm5, %v1514_v4 }
 0x161   : > { %624 = vst.msk [vmem:[%s1725_s14 + $0x40] sm:$0xff] (!%p1123_p10), %vm615_vm5, %v1514_v4  ;;  %625 = vst.msk [vmem:[%s1725_s14 + $0x48] sm:$0xff] (!%p1123_p10), %vm615_vm5, %v1514_v4 }
 0x162   : > { %626 = vst.msk [vmem:[%s1725_s14 + $0x50] sm:$0xff] (!%p1123_p10), %vm615_vm5, %v1514_v4  ;;  %627 = vst.msk [vmem:[%s1725_s14 + $0x58] sm:$0xff] (!%p1123_p10), %vm615_vm5, %v1514_v4 }
 0x163   : > { %628 = vst.msk [vmem:[%s1725_s14 + $0x60] sm:$0xff] %vm615_vm5, %v1514_v4  ;;  %629 = vst.msk [vmem:[%s1725_s14 + $0x68] sm:$0xff] %vm615_vm5, %v1514_v4 }
 0x164   : > { %630 = vst.msk [vmem:[%s1725_s14 + $0x70] sm:$0xff] %vm615_vm5, %v1514_v4  ;;  %631 = vst.msk [vmem:[%s1725_s14 + $0x78] sm:$0xff] %vm615_vm5, %v1514_v4 }
 0x165   : > { %632 = vst.msk [vmem:[%s1725_s14 + $0x80] sm:$0xff] %vm615_vm5, %v1514_v4  ;;  %633 = vst.msk [vmem:[%s1725_s14 + $0x88] sm:$0xff] %vm615_vm5, %v1514_v4 }
 0x166   : > { %634 = vst.msk [vmem:[%s1725_s14 + $0x90] sm:$0xff] %vm615_vm5, %v1514_v4  ;;  %635 = vst.msk [vmem:[%s1725_s14 + $0x98] sm:$0xff] %vm615_vm5, %v1514_v4 }
 0x167   : > { %636 = vst.msk [vmem:[%s1725_s14 + $0xa0] sm:$0xff] %vm615_vm5, %v1514_v4  ;;  %637 = vst.msk [vmem:[%s1725_s14 + $0xa8] sm:$0xff] %vm615_vm5, %v1514_v4 }
 0x168   : > { %638 = vst.msk [vmem:[%s1725_s14 + $0xb0] sm:$0xff] %vm615_vm5, %v1514_v4  ;;  %639 = vst.msk [vmem:[%s1725_s14 + $0xb8] sm:$0xff] %vm615_vm5, %v1514_v4 }
 0x169   : > { %640 = vst.msk [vmem:[%s1725_s14 + $0xc0] sm:$0xff] %vm615_vm5, %v1514_v4  ;;  %641 = vst.msk [vmem:[%s1725_s14 + $0xc8] sm:$0xff] %vm615_vm5, %v1514_v4 }
 0x16a   : > { %642 = vst.msk [vmem:[%s1725_s14 + $0xd0] sm:$0xff] %vm615_vm5, %v1514_v4  ;;  %643 = vst.msk [vmem:[%s1725_s14 + $0xd8] sm:$0xff] %vm615_vm5, %v1514_v4 }
 0x16b   : > { %644 = vst.msk [vmem:[%s1725_s14 + $0xe0] sm:$0xff] %vm615_vm5, %v1514_v4  ;;  %645 = vst.msk [vmem:[%s1725_s14 + $0xe8] sm:$0xff] %vm615_vm5, %v1514_v4 }
 0x16c   : > { %646 = vst.msk [vmem:[%s1725_s14 + $0xf0] sm:$0xff] %vm615_vm5, %v1514_v4  ;;  %647 = vst.msk [vmem:[%s1725_s14 + $0xf8] sm:$0xff] %vm615_vm5, %v1514_v4 }
 0x16d   : > { %648 = vst [vmem:[%s1730_s11] sm:$0x1] %v1514_v4 }
 0x16e PF: > { %vm654_vm6 = vcmp.eq.s32.totalorder %v1705_v11, %v1811_v61  ;;  %vm652_vm7 = vcmp.eq.s32.totalorder %v1690_v5, %v1811_v61  ;;  %vm655_vm8 = vcmp.eq.s32.totalorder %v1708_v12, %v1811_v61  ;;  %v1515_v6 = vmov 0.0   ;;  %s1160_s0 = sshll.u32 %s1808_s26, 4  ;;  %s2183_s24 = scalar_lea.vmem [#allocation3], %s1685_s9 }
 0x16f   : > { %v1126_v7 = vsel %vm654_vm6, 1.0, %v1515_v6  ;;  %v1124_v8 = vsel %vm652_vm7, 1.0, %v1515_v6  ;;  %vm653_vm9 = vcmp.eq.s32.totalorder %v1702_v10, %v1811_v61  ;;  %v1127_v9 = vsel %vm655_vm8, 1.0, %v1515_v6  ;;  %s936_s16 = sshll.u32 %s2183_s24, 4  ;;  %s2184_s3 = sld [smem:[#allocation16_spill]]  ;;  %s937_s16 = int_to_ptr.vmem [resolvable:$true] %s936_s16 }
 0x170   : > { %688 = vadd.xlane.f32.xlu1 %v1126_v7  ;;  %684 = vadd.xlane.f32.xlu0 %v1124_v8  ;;  %v1125_v17 = vsel %vm653_vm9, 1.0, %v1515_v6  ;;  %vm657_vm10 = vcmp.eq.s32.totalorder %v1714_v14, %v1811_v61  ;;  %vm656_vm11 = vcmp.eq.s32.totalorder %v1711_v13, %v1811_v61  ;;  %vm659_vm12 = vcmp.eq.s32.totalorder %v1720_v16, %v1811_v61  ;;  %s913_s12 = scalar_lea.sflag [#allocation4], %s1685_s9  ;;  %s1337_s10 = scalar_lea.vmem %s937_s16, 16 }
 0x171   : > { %v1129_v63 = vsel %vm657_vm10, 1.0, %v1515_v6  ;;  %v1128_v0 = vsel %vm656_vm11, 1.0, %v1515_v6  ;;  %vm658_vm13 = vcmp.eq.s32.totalorder %v1717_v15, %v1811_v61  ;;  %v1132_v1 = vadd.s32 4294967232, %v1811_v61  ;;  %p1338_p11 = scmp.ne.s32.totalorder %s937_s16, %s1337_s10  ;;  %s1516_s1 = smov [#allocation3]  }
 0x172   : > { %v1131_v2 = vsel %vm659_vm12, 1.0, %v1515_v6  ;;  %v1130_v3 = vsel %vm658_vm13, 1.0, %v1515_v6  ;;  %v1141_v25 = vadd.s32 4294967168, %v1811_v61  ;;  %v1150_v34 = vadd.s32 4294967104, %v1811_v61  ;;  %s1341_s2 = sshll.u32 %s1516_s1, 4  ;;  %s1342_s2 = int_to_ptr.vmem [resolvable:$false] %s1341_s2 }
 0x173   : > { %vm719_vm14 = vcmp.eq.s32.totalorder %v1702_v10, %v1132_v1  ;;  %vm718_vm15 = vcmp.eq.s32.totalorder %v1690_v5, %v1132_v1  ;;  %vm721_vm0 = vcmp.eq.s32.totalorder %v1708_v12, %v1132_v1  ;;  %vm720_vm1 = vcmp.eq.s32.totalorder %v1705_v11, %v1132_v1  ;;  %p1339_p12 = pnand %p1338_p11, %p1632_p7  ;;  %s1343_s7 = scalar_lea.vmem %s1342_s2, 32 }
 0x174   : > { %690 = vadd.xlane.f32.xlu1 %v1127_v9  ;;  %686 = vadd.xlane.f32.xlu0 %v1125_v17  ;;  %v1134_v19 = vsel %vm719_vm14, 1.0, %v1515_v6  ;;  %v1133_v20 = vsel %vm718_vm15, 1.0, %v1515_v6  ;;  %v1136_v21 = vsel %vm721_vm0, 1.0, %v1515_v6  ;;  %v1135_v22 = vsel %vm720_vm1, 1.0, %v1515_v6  ;;  %p1344_p2 = scmp.lt.s32.totalorder %s937_s16, %s1342_s2  ;;  %p1345_p3 = scmp.lt.s32.totalorder %s1343_s7, %s1337_s10 }
 0x175   : > { %vm723_vm2 = vcmp.eq.s32.totalorder %v1714_v14, %v1132_v1  ;;  %vm722_vm3 = vcmp.eq.s32.totalorder %v1711_v13, %v1132_v1  ;;  %vm725_vm4 = vcmp.eq.s32.totalorder %v1720_v16, %v1132_v1  ;;  %vm724_vm5 = vcmp.eq.s32.totalorder %v1717_v15, %v1132_v1  ;;  %s1964_s4 = scalar_lea.hbm %s2184_s3, %s1160_s0  ;;  %p1340_p13 = pneg %p1339_p12 }
 0x176   : > { %v1138_v23 = vsel %vm723_vm2, 1.0, %v1515_v6  ;;  %v1137_v24 = vsel %vm722_vm3, 1.0, %v1515_v6  ;;  %v1140_v26 = vsel %vm725_vm4, 1.0, %v1515_v6  ;;  %v1139_v27 = vsel %vm724_vm5, 1.0, %v1515_v6  ;;  %p1346_p4 = por %p1345_p3, %p1344_p2 }
 0x177   : > { %vm784_vm6 = vcmp.eq.s32.totalorder %v1702_v10, %v1141_v25  ;;  %vm783_vm7 = vcmp.eq.s32.totalorder %v1690_v5, %v1141_v25  ;;  %vm786_vm8 = vcmp.eq.s32.totalorder %v1708_v12, %v1141_v25  ;;  %vm785_vm9 = vcmp.eq.s32.totalorder %v1705_v11, %v1141_v25 }
 0x178   : > { %694 = vadd.xlane.f32.xlu1 %v1129_v63  ;;  %692 = vadd.xlane.f32.xlu0 %v1128_v0  ;;  %v1143_v28 = vsel %vm784_vm6, 1.0, %v1515_v6  ;;  %v1142_v29 = vsel %vm783_vm7, 1.0, %v1515_v6  ;;  %v1145_v30 = vsel %vm786_vm8, 1.0, %v1515_v6  ;;  %v1144_v31 = vsel %vm785_vm9, 1.0, %v1515_v6  ;;  %p1347_p5 = pnand %p1346_p4, %p1340_p13 }
 0x179   : > { %vm788_vm10 = vcmp.eq.s32.totalorder %v1714_v14, %v1141_v25  ;;  %vm787_vm11 = vcmp.eq.s32.totalorder %v1711_v13, %v1141_v25  ;;  %vm790_vm12 = vcmp.eq.s32.totalorder %v1720_v16, %v1141_v25  ;;  %vm789_vm13 = vcmp.eq.s32.totalorder %v1717_v15, %v1141_v25 }
 0x17a   : > { %v1147_v32 = vsel %vm788_vm10, 1.0, %v1515_v6  ;;  %v1146_v33 = vsel %vm787_vm11, 1.0, %v1515_v6  ;;  %v1149_v35 = vsel %vm790_vm12, 1.0, %v1515_v6  ;;  %v1148_v36 = vsel %vm789_vm13, 1.0, %v1515_v6 }
 0x17b   : > { %vm849_vm14 = vcmp.eq.s32.totalorder %v1702_v10, %v1150_v34  ;;  %vm848_vm15 = vcmp.eq.s32.totalorder %v1690_v5, %v1150_v34  ;;  %vm851_vm0 = vcmp.eq.s32.totalorder %v1708_v12, %v1150_v34  ;;  %vm850_vm1 = vcmp.eq.s32.totalorder %v1705_v11, %v1150_v34 }
 0x17c   : > { %698 = vadd.xlane.f32.xlu1 %v1131_v2  ;;  %696 = vadd.xlane.f32.xlu0 %v1130_v3  ;;  %v1152_v37 = vsel %vm849_vm14, 1.0, %v1515_v6  ;;  %v1151_v38 = vsel %vm848_vm15, 1.0, %v1515_v6  ;;  %v1154_v39 = vsel %vm851_vm0, 1.0, %v1515_v6  ;;  %v1153_v40 = vsel %vm850_vm1, 1.0, %v1515_v6 }
 0x17d   : > { %vm853_vm2 = vcmp.eq.s32.totalorder %v1714_v14, %v1150_v34  ;;  %vm852_vm3 = vcmp.eq.s32.totalorder %v1711_v13, %v1150_v34  ;;  %vm855_vm4 = vcmp.eq.s32.totalorder %v1720_v16, %v1150_v34  ;;  %vm854_vm5 = vcmp.eq.s32.totalorder %v1717_v15, %v1150_v34  ;;  %v649_v13 = vld [vmem:[%s1730_s11] sm:$0x1] }
 0x17e   : > { %v1156_v5 = vsel %vm853_vm2, 1.0, %v1515_v6  ;;  %v1155_v10 = vsel %vm852_vm3, 1.0, %v1515_v6  ;;  %v1158_v11 = vsel %vm855_vm4, 1.0, %v1515_v6  ;;  %v1157_v12 = vsel %vm854_vm5, 1.0, %v1515_v6 }
 0x17f   : > { %v650_v14 = vadd.f32 %v649_v13, %v1813_v62 }
 0x180   : > { %752 = vadd.xlane.f32.xlu1 %v1134_v19  ;;  %750 = vadd.xlane.f32.xlu0 %v1133_v20 }
 0x181   : > { %651 = vst [vmem:[%s1730_s11] sm:$0x1] %v650_v14 }
 0x184   : > { %756 = vadd.xlane.f32.xlu1 %v1136_v21  ;;  %754 = vadd.xlane.f32.xlu0 %v1135_v22 }
 0x188   : > { %760 = vadd.xlane.f32.xlu1 %v1138_v23  ;;  %758 = vadd.xlane.f32.xlu0 %v1137_v24 }
 0x18c   : > { %764 = vadd.xlane.f32.xlu1 %v1140_v26  ;;  %762 = vadd.xlane.f32.xlu0 %v1139_v27 }
 0x190   : > { %817 = vadd.xlane.f32.xlu1 %v1143_v28  ;;  %815 = vadd.xlane.f32.xlu0 %v1142_v29 }
 0x194   : > { %821 = vadd.xlane.f32.xlu1 %v1145_v30  ;;  %819 = vadd.xlane.f32.xlu0 %v1144_v31 }
 0x198   : > { %825 = vadd.xlane.f32.xlu1 %v1147_v32  ;;  %823 = vadd.xlane.f32.xlu0 %v1146_v33 }
 0x19c   : > { %829 = vadd.xlane.f32.xlu1 %v1149_v35  ;;  %827 = vadd.xlane.f32.xlu0 %v1148_v36 }
 0x1a0   : > { %882 = vadd.xlane.f32.xlu1 %v1152_v37  ;;  %880 = vadd.xlane.f32.xlu0 %v1151_v38 }
 0x1a4   : > { %886 = vadd.xlane.f32.xlu1 %v1154_v39  ;;  %884 = vadd.xlane.f32.xlu0 %v1153_v40 }
 0x1a8   : > { %890 = vadd.xlane.f32.xlu1 %v1156_v5  ;;  %888 = vadd.xlane.f32.xlu0 %v1155_v10 }
 0x1ac   : > { %894 = vadd.xlane.f32.xlu1 %v1158_v11  ;;  %892 = vadd.xlane.f32.xlu0 %v1157_v12 }
 0x1ad   : > { %1350 = shalt.err (!%p1347_p5)
}
 0x1ae   : > { %s1351_s9 = scalar_lea.hbm %s1964_s4, 16  ;;  %s1355_s1 = scalar_lea.hbm %s2184_s3, 64 }
 0x1af   : > { %p1352_p6 = scmp.ne.s32.totalorder %s1964_s4, %s1351_s9  ;;  %p1356_p11 = scmp.lt.u32.totalorder %s1964_s4, %s2184_s3 }
 0x1b0   : > { %p1357_p12 = scmp.lt.u32.totalorder %s1355_s1, %s1351_s9  ;;  %p1359_p2 = scmp.lt.u32.totalorder %s1351_s9, %s1964_s4 }
 0x1b1   : > { %p1353_p8 = pnand %p1352_p6, %p1632_p7 }
 0x1b2   : > { %p1358_p13 = por %p1357_p12, %p1356_p11 }
 0x1b3   : > { %p1354_p10 = pneg %p1353_p8 }
 0x1b4   : > { %p1360_p3 = por %p1359_p2, %p1358_p13 }
 0x1b6   : > { %p1361_p4 = pnand %p1360_p3, %p1354_p10 }
 0x1b8   : > { %1364 = shalt.err (!%p1361_p4)
}
 0x1b9   : > { %1208 = dma.vmem_to_hbm [thread:$0]  (%p1632_p7), %s937_s16, 16, %s1964_s4, %s913_s12  }
 0x1ba   : > { %s1161_s7 = sshll.u32 %s1487_s25, 4  ;;  %s953_s17 = sshll.u32 %s1730_s11, 4  ;;  %s954_s17 = int_to_ptr.vmem [resolvable:$true] %s953_s17 }
 0x1bb   : > { %s2185_s26 = sld [smem:[#allocation18_spill]]  ;;  %s2187_s9 = sand.u32 1, %s1463_s19  }
 0x1bc   : > { %s922_s1 = scalar_lea.sflag [#allocation6], %s2187_s9  ;;  %s1365_s2 = scalar_lea.vmem %s954_s17, 16 }
 0x1bd   : > { %p1366_p5 = scmp.ne.s32.totalorder %s954_s17, %s1365_s2  ;;  %s1517_s13 = smov [#allocation5]  }
 0x1be   : > { %s1369_s3 = sshll.u32 %s1517_s13, 4  ;;  %s1370_s3 = int_to_ptr.vmem [resolvable:$false] %s1369_s3 }
 0x1bf   : > { %p1367_p6 = pnand %p1366_p5, %p1664_p0  ;;  %s1371_s6 = scalar_lea.vmem %s1370_s3, 32 }
 0x1c0   : > { %p1372_p7 = scmp.lt.s32.totalorder %s954_s17, %s1370_s3  ;;  %p1373_p10 = scmp.lt.s32.totalorder %s1371_s6, %s1365_s2 }
 0x1c1   : > { %s2186_s0 = smov %s2185_s26  ;;  %s1990_s24 = scalar_lea.hbm %s2185_s26, %s1161_s7 }
 0x1c2   : > { %p1368_p8 = pneg %p1367_p6  ;;  %p1374_p11 = por %p1373_p10, %p1372_p7 }
 0x1c4   : > { %p1375_p12 = pnand %p1374_p11, %p1368_p8 }
 0x1c6   : > { %1378 = shalt.err (!%p1375_p12)
}
 0x1c7   : > { %s1379_s25 = scalar_lea.hbm %s1990_s24, 16  ;;  %s1383_s4 = scalar_lea.hbm %s2186_s0, 32 }
 0x1c8   : > { %p1380_p13 = scmp.ne.s32.totalorder %s1990_s24, %s1379_s25  ;;  %p1384_p4 = scmp.lt.u32.totalorder %s1990_s24, %s2186_s0 }
 0x1c9   : > { %p1385_p5 = scmp.lt.u32.totalorder %s1383_s4, %s1379_s25  ;;  %p1387_p8 = scmp.lt.u32.totalorder %s1379_s25, %s1990_s24 }
 0x1ca   : > { %p1381_p2 = pnand %p1380_p13, %p1664_p0 }
 0x1cb   : > { %p1386_p6 = por %p1385_p5, %p1384_p4 }
 0x1cc   : > { %p1382_p3 = pneg %p1381_p2 }
 0x1cd   : > { %p1388_p7 = por %p1387_p8, %p1386_p6 }
 0x1cf   : > { %p1389_p10 = pnand %p1388_p7, %p1382_p3 }
 0x1d1   : > { %1392 = shalt.err (!%p1389_p10)
}
 0x1d2   : > { %1209 = dma.vmem_to_hbm [thread:$0]  (%p1664_p0), %s954_s17, 16, %s1990_s24, %s922_s1   ;;  %v678_v15 = vld [vmem:[%s1725_s14 + $0x10] sm:$0xff]  ;;  %v676_v16 = vld [vmem:[%s1725_s14] sm:$0xff]  ;;  %vm708_vm6 = vcmask 7168   ;;  %v679_v45 = vld [vmem:[%s1725_s14 + $0x18] sm:$0xff] }
 0x1d3   : > { %v677_v46 = vld [vmem:[%s1725_s14 + $0x8] sm:$0xff]  ;;  %v680_v52 = vld [vmem:[%s1725_s14 + $0x20] sm:$0xff]  ;;  %v683_v57 = vld [vmem:[%s1725_s14 + $0x38] sm:$0xff] }
 0x1d4   : > { %v681_v51 = vld [vmem:[%s1725_s14 + $0x28] sm:$0xff]  ;;  %v682_v58 = vld [vmem:[%s1725_s14 + $0x30] sm:$0xff]  ;;  %v742_v4 = vld [vmem:[%s1725_s14 + $0x40] sm:$0xff] }
 0x1d5   : > { %v743_v62 = vld [vmem:[%s1725_s14 + $0x48] sm:$0xff]  ;;  %v745_v17 = vld [vmem:[%s1725_s14 + $0x58] sm:$0xff]  ;;  %v744_v63 = vld [vmem:[%s1725_s14 + $0x50] sm:$0xff] }
 0x1d6   : > { %v747_v19 = vld [vmem:[%s1725_s14 + $0x68] sm:$0xff]  ;;  %v746_v20 = vld [vmem:[%s1725_s14 + $0x60] sm:$0xff]  ;;  %v749_v25 = vld [vmem:[%s1725_s14 + $0x78] sm:$0xff] }
 0x1d7   : > { %v748_v26 = vld [vmem:[%s1725_s14 + $0x70] sm:$0xff]  ;;  %v808_v31 = vld [vmem:[%s1725_s14 + $0x88] sm:$0xff]  ;;  %v807_v32 = vld [vmem:[%s1725_s14 + $0x80] sm:$0xff] }
 0x1d8   : > { %v810_v37 = vld [vmem:[%s1725_s14 + $0x98] sm:$0xff]  ;;  %v809_v38 = vld [vmem:[%s1725_s14 + $0x90] sm:$0xff]  ;;  %v812_v11 = vld [vmem:[%s1725_s14 + $0xa8] sm:$0xff] }
 0x1d9   : > { %v811_v12 = vld [vmem:[%s1725_s14 + $0xa0] sm:$0xff] }
 0x1fd   : > { %v689_v41 = vpop.xlane.xlu1 %688  ;;  %v685_v42 = vpop.xlane.xlu0 %684 }
 0x1fe   : > { %v702_v43 = vadd.f32 %v689_v41, %v678_v15  ;;  %v700_v44 = vadd.f32 %v685_v42, %v676_v16  ;;  %v814_v41 = vld [vmem:[%s1725_s14 + $0xb8] sm:$0xff]  ;;  %v813_v42 = vld [vmem:[%s1725_s14 + $0xb0] sm:$0xff] }
 0x200   : > { %711 = vst.msk [vmem:[%s1725_s14 + $0x10] sm:$0xff] %vm708_vm6, %v702_v43  ;;  %709 = vst.msk [vmem:[%s1725_s14] sm:$0xff] %vm708_vm6, %v700_v44 }
 0x201   : > { %v691_v47 = vpop.xlane.xlu1 %690  ;;  %v687_v48 = vpop.xlane.xlu0 %686 }
 0x202   : > { %v703_v49 = vadd.f32 %v691_v47, %v679_v45  ;;  %v701_v50 = vadd.f32 %v687_v48, %v677_v46  ;;  %v873_v47 = vld [vmem:[%s1725_s14 + $0xc8] sm:$0xff]  ;;  %v872_v48 = vld [vmem:[%s1725_s14 + $0xc0] sm:$0xff] }
 0x204   : > { %712 = vst.msk [vmem:[%s1725_s14 + $0x18] sm:$0xff] %vm708_vm6, %v703_v49  ;;  %710 = vst.msk [vmem:[%s1725_s14 + $0x8] sm:$0xff] %vm708_vm6, %v701_v50 }
 0x205   : > { %v695_v53 = vpop.xlane.xlu1 %694  ;;  %v693_v54 = vpop.xlane.xlu0 %692 }
 0x206   : > { %v705_v55 = vadd.f32 %v695_v53, %v681_v51  ;;  %v704_v56 = vadd.f32 %v693_v54, %v680_v52  ;;  %v875_v53 = vld [vmem:[%s1725_s14 + $0xd8] sm:$0xff]  ;;  %v874_v54 = vld [vmem:[%s1725_s14 + $0xd0] sm:$0xff] }
 0x208   : > { %714 = vst.msk [vmem:[%s1725_s14 + $0x28] sm:$0xff] %vm708_vm6, %v705_v55  ;;  %713 = vst.msk [vmem:[%s1725_s14 + $0x20] sm:$0xff] %vm708_vm6, %v704_v56 }
 0x209   : > { %v699_v59 = vpop.xlane.xlu1 %698  ;;  %v697_v18 = vpop.xlane.xlu0 %696 }
 0x20a   : > { %v707_v60 = vadd.f32 %v699_v59, %v683_v57  ;;  %v706_v61 = vadd.f32 %v697_v18, %v682_v58  ;;  %v877_v59 = vld [vmem:[%s1725_s14 + $0xe8] sm:$0xff]  ;;  %v876_v18 = vld [vmem:[%s1725_s14 + $0xe0] sm:$0xff] }
 0x20c   : > { %716 = vst.msk [vmem:[%s1725_s14 + $0x38] sm:$0xff] %vm708_vm6, %v707_v60  ;;  %715 = vst.msk [vmem:[%s1725_s14 + $0x30] sm:$0xff] %vm708_vm6, %v706_v61 }
 0x20d   : > { %v753_v6 = vpop.xlane.xlu1 %752  ;;  %v751_v7 = vpop.xlane.xlu0 %750 }
 0x20e   : > { %v767_v8 = vadd.f32 %v753_v6, %v743_v62  ;;  %v766_v9 = vadd.f32 %v751_v7, %v742_v4  ;;  %v879_v6 = vld [vmem:[%s1725_s14 + $0xf8] sm:$0xff]  ;;  %v878_v7 = vld [vmem:[%s1725_s14 + $0xf0] sm:$0xff] }
 0x210   : > { %775 = vst.msk [vmem:[%s1725_s14 + $0x48] sm:$0xff] %vm708_vm6, %v767_v8  ;;  %774 = vst.msk [vmem:[%s1725_s14 + $0x40] sm:$0xff] %vm708_vm6, %v766_v9 }
 0x211   : > { %v757_v0 = vpop.xlane.xlu1 %756  ;;  %v755_v1 = vpop.xlane.xlu0 %754 }
 0x212   : > { %v769_v2 = vadd.f32 %v757_v0, %v745_v17  ;;  %v768_v3 = vadd.f32 %v755_v1, %v744_v63 }
 0x214   : > { %777 = vst.msk [vmem:[%s1725_s14 + $0x58] sm:$0xff] %vm708_vm6, %v769_v2  ;;  %776 = vst.msk [vmem:[%s1725_s14 + $0x50] sm:$0xff] %vm708_vm6, %v768_v3 }
 0x215   : > { %v761_v21 = vpop.xlane.xlu1 %760  ;;  %v759_v22 = vpop.xlane.xlu0 %758 }
 0x216   : > { %v771_v23 = vadd.f32 %v761_v21, %v747_v19  ;;  %v770_v24 = vadd.f32 %v759_v22, %v746_v20 }
 0x218   : > { %779 = vst.msk [vmem:[%s1725_s14 + $0x68] sm:$0xff] %vm708_vm6, %v771_v23  ;;  %778 = vst.msk [vmem:[%s1725_s14 + $0x60] sm:$0xff] %vm708_vm6, %v770_v24 }
 0x219   : > { %v765_v27 = vpop.xlane.xlu1 %764  ;;  %v763_v28 = vpop.xlane.xlu0 %762 }
 0x21a   : > { %v773_v29 = vadd.f32 %v765_v27, %v749_v25  ;;  %v772_v30 = vadd.f32 %v763_v28, %v748_v26 }
 0x21c   : > { %781 = vst.msk [vmem:[%s1725_s14 + $0x78] sm:$0xff] %vm708_vm6, %v773_v29  ;;  %780 = vst.msk [vmem:[%s1725_s14 + $0x70] sm:$0xff] %vm708_vm6, %v772_v30 }
 0x21d   : > { %v818_v33 = vpop.xlane.xlu1 %817  ;;  %v816_v34 = vpop.xlane.xlu0 %815 }
 0x21e   : > { %v832_v35 = vadd.f32 %v818_v33, %v808_v31  ;;  %v831_v36 = vadd.f32 %v816_v34, %v807_v32 }
 0x220   : > { %840 = vst.msk [vmem:[%s1725_s14 + $0x88] sm:$0xff] %vm708_vm6, %v832_v35  ;;  %839 = vst.msk [vmem:[%s1725_s14 + $0x80] sm:$0xff] %vm708_vm6, %v831_v36 }
 0x221   : > { %v822_v39 = vpop.xlane.xlu1 %821  ;;  %v820_v40 = vpop.xlane.xlu0 %819 }
 0x222   : > { %v834_v5 = vadd.f32 %v822_v39, %v810_v37  ;;  %v833_v10 = vadd.f32 %v820_v40, %v809_v38 }
 0x224   : > { %842 = vst.msk [vmem:[%s1725_s14 + $0x98] sm:$0xff] %vm708_vm6, %v834_v5  ;;  %841 = vst.msk [vmem:[%s1725_s14 + $0x90] sm:$0xff] %vm708_vm6, %v833_v10 }
 0x225   : > { %v826_v13 = vpop.xlane.xlu1 %825  ;;  %v824_v14 = vpop.xlane.xlu0 %823 }
 0x226   : > { %v836_v15 = vadd.f32 %v826_v13, %v812_v11  ;;  %v835_v16 = vadd.f32 %v824_v14, %v811_v12 }
 0x228   : > { %844 = vst.msk [vmem:[%s1725_s14 + $0xa8] sm:$0xff] %vm708_vm6, %v836_v15  ;;  %843 = vst.msk [vmem:[%s1725_s14 + $0xa0] sm:$0xff] %vm708_vm6, %v835_v16 }
 0x229   : > { %v830_v43 = vpop.xlane.xlu1 %829  ;;  %v828_v44 = vpop.xlane.xlu0 %827 }
 0x22a   : > { %v838_v45 = vadd.f32 %v830_v43, %v814_v41  ;;  %v837_v46 = vadd.f32 %v828_v44, %v813_v42 }
 0x22c   : > { %846 = vst.msk [vmem:[%s1725_s14 + $0xb8] sm:$0xff] %vm708_vm6, %v838_v45  ;;  %845 = vst.msk [vmem:[%s1725_s14 + $0xb0] sm:$0xff] %vm708_vm6, %v837_v46 }
 0x22d   : > { %v883_v49 = vpop.xlane.xlu1 %882  ;;  %v881_v50 = vpop.xlane.xlu0 %880 }
 0x22e   : > { %v897_v51 = vadd.f32 %v883_v49, %v873_v47  ;;  %v896_v52 = vadd.f32 %v881_v50, %v872_v48 }
 0x230   : > { %905 = vst.msk [vmem:[%s1725_s14 + $0xc8] sm:$0xff] %vm708_vm6, %v897_v51  ;;  %904 = vst.msk [vmem:[%s1725_s14 + $0xc0] sm:$0xff] %vm708_vm6, %v896_v52 }
 0x231   : > { %v887_v55 = vpop.xlane.xlu1 %886  ;;  %v885_v56 = vpop.xlane.xlu0 %884 }
 0x232   : > { %v899_v57 = vadd.f32 %v887_v55, %v875_v53  ;;  %v898_v58 = vadd.f32 %v885_v56, %v874_v54 }
 0x234   : > { %907 = vst.msk [vmem:[%s1725_s14 + $0xd8] sm:$0xff] %vm708_vm6, %v899_v57  ;;  %906 = vst.msk [vmem:[%s1725_s14 + $0xd0] sm:$0xff] %vm708_vm6, %v898_v58 }
 0x235   : > { %v891_v60 = vpop.xlane.xlu1 %890  ;;  %v889_v61 = vpop.xlane.xlu0 %888 }
 0x236   : > { %v901_v62 = vadd.f32 %v891_v60, %v877_v59  ;;  %v900_v4 = vadd.f32 %v889_v61, %v876_v18 }
 0x238   : > { %909 = vst.msk [vmem:[%s1725_s14 + $0xe8] sm:$0xff] %vm708_vm6, %v901_v62  ;;  %908 = vst.msk [vmem:[%s1725_s14 + $0xe0] sm:$0xff] %vm708_vm6, %v900_v4 }
 0x239   : > { %v895_v8 = vpop.xlane.xlu1 %894  ;;  %v893_v9 = vpop.xlane.xlu0 %892 }
 0x23a   : > { %v903_v17 = vadd.f32 %v895_v8, %v879_v6  ;;  %v902_v63 = vadd.f32 %v893_v9, %v878_v7 }
 0x23c   : > { %911 = vst.msk [vmem:[%s1725_s14 + $0xf8] sm:$0xff] %vm708_vm6, %v903_v17  ;;  %910 = vst.msk [vmem:[%s1725_s14 + $0xf0] sm:$0xff] %vm708_vm6, %v902_v63 }
 0x23d PF: > { %s2188_s5 = sld [smem:[#allocation9_spill]]  ;;  %p1219_p0 = scmp.ge.s32.totalorder %s1499_s28, 2 }
 0x23f   : > { %p1213_p11 = pnand %p1219_p0, %p1646_p9 }
 0x243   : > { %s965_s6 = sand.u32 1, %s2188_s5  }
 0x244   : > { %s966_s7 = scalar_lea.sflag [#allocation4], %s965_s6 }
 0x245   : > { %1450 = dma.done.wait (!%p1213_p11), %s966_s7, 16  }
 0x246   : > { %1452 = vsyncadd (!%p1213_p11), %s966_s7, 4294967280  ;;  %s981_s17 = sand.u32 1, %s1459_s18   ;;  %p1216_p12 = pnand %p1219_p0, %p1670_p1 }
 0x247   : > { %s982_s8 = scalar_lea.sflag [#allocation6], %s981_s17 }
 0x248   : > { %1454 = dma.done.wait (!%p1216_p12), %s982_s8, 16  }
 0x249   : > { %1456 = vsyncadd (!%p1216_p12), %s982_s8, 4294967280  ;;  %s22_s28 = sadd.s32 1, %s1499_s28   ;;  %s2189_s24 = sld [smem:[#allocation10_spill]] }
 0x24a   : > { %p19_p13 = scmp.ge.s32.totalorder %s22_s28, 6   ;;  %s2190_s26 = sld [smem:[#allocation11_spill]] }
 0x24b   : > { %s2191_s29 = sld [smem:[#allocation12_spill]]  ;;  %s2192_s18 = smov %s1463_s19 }
 0x24c   : > { %s2193_s19 = smov %s1467_s20  ;;  %s2194_s20 = smov %s1653_s21 }
 0x24d   : > { %s2195_s21 = smov %s1475_s22  ;;  %s2196_s22 = smov %s1479_s23 }
 0x24e   : > { %s2197_s23 = smov %s1656_s30  ;;  %s2198_s25 = smov %s1495_s27 }
 0x24f   :  { %21 = sbr.rel (!%p19_p13) target bundleno = 16 (0x10), region = 163 }
 0x251   : > { %s2199_s27 = smov %s2191_s29 }
 0x256   :  { %986 = vsyncpa [#allocation4], 1 }
 0x257   :  { %988 = vsyncpa [#allocation4 + $0x1], 1 }
 0x258   :  { %989 = vsyncpa [#allocation6], 1 }
 0x259   :  { %991 = vsyncpa [#allocation6 + $0x1], 1 }

</bundles_post_ra>
